<compile_context>
chip_gen: v7x
topology: tpu7x:2x2x1
jax: 0.10.0
libtpu: 0.0.40
codegen_flags: <defaults>
</compile_context>

<pallas_src>
import functools

import jax
import jax.numpy as jnp
from jax.experimental import pallas as pl
from jax.experimental.pallas import tpu as pltpu


def _round_up(x, m):
    return ((x + m - 1) // m) * m


def _loss_body(a, c, pos_f, self_mask, out_ref, inv_t, scale):
    """Shared per-tile loss computation.

    a: [TILE_A, D] anchor features (native dtype, e.g. f32 or bf16)
    c: [N, D] contrast features
    pos_f: [TILE_A, N] f32 positive weights (self pairs already zeroed)
    self_mask: [TILE_A, N] bool, True on the "self" pairs to exclude
    """
    # anchor_dot_contrast / temperature on the MXU, contracting the shared
    # feature dim directly (no transpose of `c`), f32 accumulation.
    logits = jax.lax.dot_general(
        a, c, dimension_numbers=(((1,), (1,)), ((), ())),
        preferred_element_type=jnp.float32) * inv_t
    # Numerical stability: subtract per-row max (detach is a no-op in fwd).
    logits = logits - jnp.max(logits, axis=1, keepdims=True)
    # Fold the self-mask into the logits before exp instead of exp(...) * mask:
    # exp(-1e30) underflows to exactly 0, same as the masked multiply.
    exp_logits = jnp.exp(jnp.where(self_mask, jnp.float32(-1e30), logits))
    lse = jnp.log(jnp.sum(exp_logits, axis=1, keepdims=True))    # [TILE_A, 1]
    den = jnp.sum(pos_f, axis=1, keepdims=True)                  # [TILE_A, 1]
    # sum(pos * (logits - lse)) == sum(pos * logits) - lse * den; avoids
    # materializing the full [TILE_A, N] log_prob tile.
    num = jnp.sum(pos_f * logits, axis=1, keepdims=True) - lse * den
    # NOTE: anchors with zero positives divide by zero (NaN), exactly like the
    # reference PyTorch implementation.  Padded anchor rows (which hit this)
    # are sliced away in the wrapper before the final mean.
    out_ref[...] = (scale * (num / den)).astype(out_ref.dtype)


def _supcon_labels_kernel(al_ref, cl_ref, a_ref, c_ref, out_ref, *, inv_t, scale):
    """Labels / SimCLR path: both masks are built inside the kernel."""
    tile_a = a_ref.shape[0]
    n = c_ref.shape[0]
    row0 = pl.program_id(0) * tile_a
    row = jax.lax.broadcasted_iota(jnp.int32, (tile_a, n), 0) + row0
    col = jax.lax.broadcasted_iota(jnp.int32, (tile_a, n), 1)
    self_mask = row == col                                     # excluded "self"
    pos = jnp.logical_and(al_ref[...] == cl_ref[...],          # same label ...
                          jnp.logical_not(self_mask))          # ... minus self
    _loss_body(a_ref[...], c_ref[...], pos.astype(jnp.float32), self_mask,
               out_ref, inv_t, scale)


def _supcon_mask_kernel(mask_ref, a_ref, c_ref, out_ref, *, inv_t, scale):
    """Explicit (possibly asymmetric / non-binary) user-mask path."""
    tile_a = a_ref.shape[0]
    n = c_ref.shape[0]
    row0 = pl.program_id(0) * tile_a
    row = jax.lax.broadcasted_iota(jnp.int32, (tile_a, n), 0) + row0
    col = jax.lax.broadcasted_iota(jnp.int32, (tile_a, n), 1)
    self_mask = row == col
    pos_f = jnp.where(self_mask, 0.0, mask_ref[...].astype(jnp.float32))
    _loss_body(a_ref[...], c_ref[...], pos_f, self_mask, out_ref, inv_t, scale)


def supcon_loss(features, labels=None, mask=None, *, temperature=0.07,
                contrast_mode='all', base_temperature=0.07):
    """JAX/Pallas re-implementation of SupConLoss.forward (forward only)."""
    if features.ndim < 3:
        raise ValueError('`features` needs to be [bsz, n_views, ...]')
    if features.ndim > 3:
        features = features.reshape(features.shape[0], features.shape[1], -1)
    bsz, n_views, dim = features.shape

    if labels is not None and mask is not None:
        raise ValueError('Cannot define both `labels` and `mask`')

    contrast_count = n_views
    # torch.cat(torch.unbind(features, dim=1), dim=0) -> view-major stacking.
    contrast_feature = jnp.concatenate(
        [features[:, v, :] for v in range(n_views)], axis=0)           # [N, D]

    if contrast_mode == 'one':
        anchor_feature = features[:, 0, :]
        anchor_count = 1
    elif contrast_mode == 'all':
        anchor_feature = contrast_feature
        anchor_count = contrast_count
    else:
        raise ValueError('Unknown mode: {}'.format(contrast_mode))

    A = anchor_count * bsz
    N = contrast_count * bsz

    # Anchor-row tiling (grid over A).  16-row alignment keeps both f32 (8)
    # and bf16 (16) sublane tiling happy; cap at 256 (MXU-friendly on v6e).
    if A <= 256:
        tile_a = _round_up(A, 16)
        a_pad = tile_a
    else:
        tile_a = 256
        a_pad = _round_up(A, tile_a)
    grid = (a_pad // tile_a,)
    pad_rows = a_pad - A

    # Features are passed at their native dtype (bf16 goes straight to the MXU).
    anchor_feature_p = jnp.pad(anchor_feature, ((0, pad_rows), (0, 0)))

    inv_t = 1.0 / float(temperature)
    scale = -(float(temperature) / float(base_temperature))

    common = dict(
        out_shape=jax.ShapeDtypeStruct((a_pad, 1), jnp.float32),
        compiler_params=pltpu.CompilerParams(
            dimension_semantics=("parallel",)),
    )

    # TODO(synk): for extremely large N the [TILE_A, N] logits tile should also
    # be tiled over N with an online-softmax accumulator; not needed at the
    # batch sizes SupCon is run at.
    if mask is None:
        # labels / SimCLR path (eye mask == unique labels): masks built in-kernel.
        if labels is None:
            labels = jnp.arange(bsz, dtype=jnp.int32)
        else:
            labels = jnp.asarray(labels).reshape(-1)
            if labels.shape[0] != bsz:
                raise ValueError('Num of labels does not match num of features')
            labels = labels.astype(jnp.int32)
        contrast_labels = jnp.tile(labels, contrast_count).reshape(1, N)
        anchor_labels = jnp.tile(labels, anchor_count)
        anchor_labels = jnp.pad(anchor_labels, (0, pad_rows),
                                constant_values=-1).reshape(a_pad, 1)

        kernel = functools.partial(_supcon_labels_kernel,
                                   inv_t=inv_t, scale=scale)
        grid_spec = pltpu.PrefetchScalarGridSpec(
            num_scalar_prefetch=0, grid=grid,
            in_specs=[
                pl.BlockSpec((tile_a, 1), lambda g: (g, 0)),      # anchor labels
                pl.BlockSpec((1, N), lambda g: (0, 0)),           # contrast labels
                pl.BlockSpec((tile_a, dim), lambda g: (g, 0)),    # anchor feats
                pl.BlockSpec((N, dim), lambda g: (0, 0)),         # contrast feats
            ],
            out_specs=pl.BlockSpec((tile_a, 1), lambda g: (g, 0)),
        )
        per_anchor = pl.pallas_call(kernel, grid_spec=grid_spec, **common)(
            anchor_labels, contrast_labels, anchor_feature_p, contrast_feature)
    else:
        # Explicit user mask (may be asymmetric / non-binary): tile it on the
        # host; the self mask is still built in-kernel from iota.
        mask = jnp.asarray(mask).astype(jnp.float32)
        full_mask = jnp.tile(mask, (anchor_count, contrast_count))    # [A, N]
        full_mask = jnp.pad(full_mask, ((0, pad_rows), (0, 0)))

        kernel = functools.partial(_supcon_mask_kernel,
                                   inv_t=inv_t, scale=scale)
        grid_spec = pltpu.PrefetchScalarGridSpec(
            num_scalar_prefetch=0, grid=grid,
            in_specs=[
                pl.BlockSpec((tile_a, N), lambda g: (g, 0)),      # positive mask
                pl.BlockSpec((tile_a, dim), lambda g: (g, 0)),    # anchor feats
                pl.BlockSpec((N, dim), lambda g: (0, 0)),         # contrast feats
            ],
            out_specs=pl.BlockSpec((tile_a, 1), lambda g: (g, 0)),
        )
        per_anchor = pl.pallas_call(kernel, grid_spec=grid_spec, **common)(
            full_mask, anchor_feature_p, contrast_feature)

    # loss.view(anchor_count, batch_size).mean() == mean over all A anchors.
    return jnp.mean(per_anchor[:A, 0])


def _supcon_loss_ref(features, labels=None, mask=None, *, temperature=0.07,
                     contrast_mode='all', base_temperature=0.07):
    """Pure-JAX reference (mirrors the PyTorch module) for verification."""
    features = features.astype(jnp.float32)
    bsz, n_views, _ = features.shape
    if labels is None and mask is None:
        mask = jnp.eye(bsz, dtype=jnp.float32)
    elif labels is not None:
        labels = labels.reshape(-1, 1)
        mask = (labels == labels.T).astype(jnp.float32)
    else:
        mask = mask.astype(jnp.float32)
    contrast_feature = jnp.concatenate(
        [features[:, v, :] for v in range(n_views)], axis=0)
    if contrast_mode == 'one':
        anchor_feature, anchor_count = features[:, 0, :], 1
    else:
        anchor_feature, anchor_count = contrast_feature, n_views
    A = anchor_count * bsz
    N = n_views * bsz
    adc = (anchor_feature @ contrast_feature.T) / temperature
    logits = adc - jnp.max(adc, axis=1, keepdims=True)
    mask = jnp.tile(mask, (anchor_count, n_views))
    ri = jax.lax.broadcasted_iota(jnp.int32, (A, N), 0)
    ci = jax.lax.broadcasted_iota(jnp.int32, (A, N), 1)
    lm = jnp.where(ri == ci, 0.0, 1.0)
    mask = mask * lm
    exp_logits = jnp.exp(logits) * lm
    log_prob = logits - jnp.log(jnp.sum(exp_logits, axis=1, keepdims=True))
    mlpp = jnp.sum(mask * log_prob, axis=1) / jnp.sum(mask, axis=1)
    return jnp.mean(-(temperature / base_temperature) * mlpp)


if __name__ == "__main__":
    key = jax.random.PRNGKey(0)
    bsz, n_views, dim = 8, 2, 32
    kf, kl = jax.random.split(key)
    features = jax.random.normal(kf, (bsz, n_views, dim), dtype=jnp.float32)
    # L2-normalize as typical for contrastive embeddings (not required by module).
    features = features / jnp.linalg.norm(features, axis=-1, keepdims=True)
    labels = jax.random.randint(kl, (bsz,), 0, 4)

    # 1) Unsupervised (SimCLR): labels=None, mask=None.
    loss_unsup = supcon_loss(features)
    jax.block_until_ready(loss_unsup)
    assert jnp.allclose(loss_unsup, _supcon_loss_ref(features),
                        rtol=1e-5, atol=1e-5)

    # 2) Supervised with labels.
    loss_sup = supcon_loss(features, labels=labels)
    jax.block_until_ready(loss_sup)
    assert jnp.allclose(loss_sup, _supcon_loss_ref(features, labels=labels),
                        rtol=1e-5, atol=1e-5)

    # 3) Explicit user-supplied mask path.
    mask = (labels.reshape(-1, 1) == labels.reshape(1, -1)).astype(jnp.float32)
    loss_mask = supcon_loss(features, mask=mask)
    jax.block_until_ready(loss_mask)
    assert jnp.allclose(loss_mask, _supcon_loss_ref(features, mask=mask),
                        rtol=1e-5, atol=1e-5)

    # 4) contrast_mode='one'.
    loss_one = supcon_loss(features, labels=labels, contrast_mode='one')
    jax.block_until_ready(loss_one)
    assert jnp.allclose(
        loss_one,
        _supcon_loss_ref(features, labels=labels, contrast_mode='one'),
        rtol=1e-5, atol=1e-5)

    # 5) bf16 features go to the MXU at native rate (softmax math stays f32).
    loss_bf16 = supcon_loss(features.astype(jnp.bfloat16), labels=labels)
    jax.block_until_ready(loss_bf16)
    ref_bf16 = _supcon_loss_ref(features.astype(jnp.bfloat16), labels=labels)
    assert jnp.allclose(loss_bf16, ref_bf16, rtol=2e-2, atol=2e-2)

    print("KERNEL_OK")
</pallas_src>

<mosaic_0001>
module attributes {stable_mosaic.version = 11 : i64} {
  func.func @_supcon_labels_kernel(%arg0: i32, %arg1: memref<16x1xi32, #tpu.memory_space<vmem>>, %arg2: memref<1x16xi32, #tpu.memory_space<vmem>>, %arg3: memref<16x32xf32, #tpu.memory_space<vmem>>, %arg4: memref<16x32xf32, #tpu.memory_space<vmem>>, %arg5: memref<16x1xf32, #tpu.memory_space<vmem>>) attributes {dimension_semantics = [#tpu.dimension_semantics<parallel>], iteration_bounds = array<i64: 1>, scalar_prefetch = 0 : i64, scratch_operands = 0 : i64, tpu.core_type = #tpu.core_type<tc>, window_params = [{transform_indices = @transform_0, window_bounds = array<i64: 16, 1>}, {pipeline_mode = #tpu.pipeline_mode<synchronous>, transform_indices = @transform_1, window_bounds = array<i64: 1, 16>}, {transform_indices = @transform_2, window_bounds = array<i64: 16, 32>}, {pipeline_mode = #tpu.pipeline_mode<synchronous>, transform_indices = @transform_3, window_bounds = array<i64: 16, 32>}, {transform_indices = @transform_4, window_bounds = array<i64: 16, 1>}]} {
    %c16_i32 = arith.constant 16 : i32
    %0 = arith.muli %arg0, %c16_i32 : i32
    %1 = tpu.iota {dimensions = array<i32: 0>} : vector<16x16xi32>
    %2 = vector.broadcast %0 : i32 to vector<16x16xi32>
    %3 = arith.addi %1, %2 : vector<16x16xi32>
    %4 = tpu.iota {dimensions = array<i32: 1>} : vector<16x16xi32>
    %5 = arith.cmpi eq, %3, %4 : vector<16x16xi32>
    %c0 = arith.constant 0 : index
    %c0_0 = arith.constant 0 : index
    %6 = vector.load %arg1[%c0, %c0_0] : memref<16x1xi32, #tpu.memory_space<vmem>>, vector<16x1xi32>
    %c0_1 = arith.constant 0 : index
    %c0_2 = arith.constant 0 : index
    %7 = vector.load %arg2[%c0_1, %c0_2] : memref<1x16xi32, #tpu.memory_space<vmem>>, vector<1x16xi32>
    %8 = vector.broadcast %6 : vector<16x1xi32> to vector<16x16xi32>
    %9 = vector.broadcast %7 : vector<1x16xi32> to vector<16x16xi32>
    %10 = arith.cmpi eq, %8, %9 : vector<16x16xi32>
    %cst = arith.constant dense<true> : vector<16x16xi1>
    %11 = arith.xori %5, %cst : vector<16x16xi1>
    %12 = arith.andi %10, %11 : vector<16x16xi1>
    %c0_3 = arith.constant 0 : index
    %c0_4 = arith.constant 0 : index
    %13 = vector.load %arg3[%c0_3, %c0_4] : memref<16x32xf32, #tpu.memory_space<vmem>>, vector<16x32xf32>
    %c0_5 = arith.constant 0 : index
    %c0_6 = arith.constant 0 : index
    %14 = vector.load %arg4[%c0_5, %c0_6] : memref<16x32xf32, #tpu.memory_space<vmem>>, vector<16x32xf32>
    %15 = arith.extui %12 : vector<16x16xi1> to vector<16x16xi32>
    %16 = arith.sitofp %15 : vector<16x16xi32> to vector<16x16xf32>
    %cst_7 = arith.constant dense<0.000000e+00> : vector<16x16xf32>
    %17 = tpu.matmul %13, %14, %cst_7 {dimension_numbers = #tpu.dot_dimension_numbers<[1], [1], [0], [0], [0, 0, 1, 0], [], []>} : vector<16x32xf32>, vector<16x32xf32>, vector<16x16xf32> -> vector<16x16xf32>
    %cst_8 = arith.constant 14.2857141 : f32
    %18 = vector.broadcast %cst_8 : f32 to vector<16x16xf32>
    %19 = arith.mulf %17, %18 : vector<16x16xf32>
    %cst_9 = arith.constant dense<0xFF800000> : vector<16xf32>
    %20 = vector.multi_reduction <maximumf>, %19, %cst_9 [1] : vector<16x16xf32> to vector<16xf32>
    %21 = vector.shape_cast %20 : vector<16xf32> to vector<16x1xf32>
    %22 = vector.broadcast %21 : vector<16x1xf32> to vector<16x16xf32>
    %23 = arith.subf %19, %22 : vector<16x16xf32>
    %cst_10 = arith.constant -1.000000e+30 : f32
    %24 = vector.broadcast %cst_10 : f32 to vector<16x16xf32>
    %25 = arith.select %5, %24, %23 : vector<16x16xi1>, vector<16x16xf32>
    %26 = math.exp %25 : vector<16x16xf32>
    %cst_11 = arith.constant dense<0.000000e+00> : vector<16xf32>
    %27 = vector.multi_reduction <add>, %26, %cst_11 [1] : vector<16x16xf32> to vector<16xf32>
    %28 = vector.shape_cast %27 : vector<16xf32> to vector<16x1xf32>
    %29 = math.log %28 : vector<16x1xf32>
    %cst_12 = arith.constant dense<0.000000e+00> : vector<16xf32>
    %30 = vector.multi_reduction <add>, %16, %cst_12 [1] : vector<16x16xf32> to vector<16xf32>
    %31 = vector.shape_cast %30 : vector<16xf32> to vector<16x1xf32>
    %32 = arith.mulf %16, %23 : vector<16x16xf32>
    %cst_13 = arith.constant dense<0.000000e+00> : vector<16xf32>
    %33 = vector.multi_reduction <add>, %32, %cst_13 [1] : vector<16x16xf32> to vector<16xf32>
    %34 = vector.shape_cast %33 : vector<16xf32> to vector<16x1xf32>
    %35 = arith.mulf %29, %31 : vector<16x1xf32>
    %36 = arith.subf %34, %35 : vector<16x1xf32>
    %37 = arith.divf %36, %31 : vector<16x1xf32>
    %cst_14 = arith.constant -1.000000e+00 : f32
    %38 = vector.broadcast %cst_14 : f32 to vector<16x1xf32>
    %39 = arith.mulf %38, %37 : vector<16x1xf32>
    %c0_15 = arith.constant 0 : index
    %c0_16 = arith.constant 0 : index
    %40 = vector.load %arg5[%c0_15, %c0_16] : memref<16x1xf32, #tpu.memory_space<vmem>>, vector<16x1xf32>
    tpu.vector_store %arg5[%c0_15, %c0_16], %39 {strides = array<i32>} : memref<16x1xf32, #tpu.memory_space<vmem>>, vector<16x1xf32>,
    return
  }
  func.func @transform_0(%arg0: i32) -> (i32, i32) {
    %c0_i32 = arith.constant 0 : i32
    %c0_i32_0 = arith.constant 0 : i32
    return %arg0, %c0_i32 : i32, i32
  }
  func.func @transform_1(%arg0: i32) -> (i32, i32) {
    %c0_i32 = arith.constant 0 : i32
    %c0_i32_0 = arith.constant 0 : i32
    %c0_i32_1 = arith.constant 0 : i32
    return %c0_i32, %c0_i32_0 : i32, i32
  }
  func.func @transform_2(%arg0: i32) -> (i32, i32) {
    %c0_i32 = arith.constant 0 : i32
    %c0_i32_0 = arith.constant 0 : i32
    return %arg0, %c0_i32 : i32, i32
  }
  func.func @transform_3(%arg0: i32) -> (i32, i32) {
    %c0_i32 = arith.constant 0 : i32
    %c0_i32_0 = arith.constant 0 : i32
    %c0_i32_1 = arith.constant 0 : i32
    return %c0_i32, %c0_i32_0 : i32, i32
  }
  func.func @transform_4(%arg0: i32) -> (i32, i32) {
    %c0_i32 = arith.constant 0 : i32
    %c0_i32_0 = arith.constant 0 : i32
    return %arg0, %c0_i32 : i32, i32
  }
}

</mosaic_0001>

<bundles_post_ra>
// kernel: tpu_custom_call.1
= control target key start
LH: loop header
LB: loop body
LE: loop exit
PB: predicated region body
PF: predicated region fallthrough
CT: control target
= control target key end

     0   :  { %9 = vsyncpa [#allocation3], 0  ;;  %s284_s15 = smov [#allocation2]   ;;  %s356_s0 = inlined_call_operand.vmem [shape: s32[16,1], index: 0, kind: input, shape index: {}]   ;;  %s357_s1 = inlined_call_operand.vmem [shape: s32[1,16], index: 1, kind: input, shape index: {}]   ;;  %s358_s2 = inlined_call_operand.vmem [shape: f32[16,32], index: 2, kind: input, shape index: {}]   ;;  %s359_s3 = inlined_call_operand.hbm [shape: f32[16,32], index: 3, kind: input, shape index: {}]   ;;  %s360_s4 = inlined_call_operand.vmem [shape: f32[16,1], index: 4, kind: output, shape index: {}]  }
   0x1   :  { %s21_s16 = sshll.u32 %s284_s15, 4  ;;  %s260_s19 = scalar_lea.hbm %s359_s3, 256  ;;  %s22_s16 = int_to_ptr.vmem [resolvable:$true] %s21_s16 }
   0x2   :  { %p261_p0 = scmp.ne.s32.totalorder %s359_s3, %s260_s19  ;;  %p264_p1 = scmp.lt.u32.totalorder %s260_s19, %s359_s3 }
   0x4   :  { %p266_p2 = pnand %p264_p1, %p261_p0 }
   0x6   :  { %269 = shalt.err (!%p266_p2)
}
   0x7   :  { %s270_s24 = scalar_lea.vmem %s22_s16, 256  ;;  %p275_p4 = scmp.lt.s32.totalorder %s22_s16, %s22_s16 }
   0x8   :  { %p271_p3 = scmp.ne.s32.totalorder %s22_s16, %s270_s24  ;;  %p276_p5 = scmp.lt.s32.totalorder %s270_s24, %s270_s24 }
   0xa   :  { %p277_p6 = por %p276_p5, %p275_p4 }
   0xc   :  { %p278_p7 = pnand %p277_p6, %p271_p3 }
   0xe   :  { %281 = shalt.err (!%p278_p7)
}
   0xf   :  { %s285_s25 = smov 128   ;;  %s286_s26 = smov 8  }
  0x10   :  { %27 = dma.hbm_to_vmem [thread:$0]  %s359_s3, 256, %s22_s16, [#allocation3], %s285_s25, %s285_s25, %s286_s26  }
  0x11   :  { %282 = dma.done.wait [#allocation3], 256  }
  0x12   :  { %283 = vsyncadd [#allocation3], 4294967040  ;;  %vm69_vm0 = vcmask 261120   ;;  %v63_v0 = vld [vmem:[#allocation2] sm:$0xff]  ;;  %v64_v1 = vld [vmem:[#allocation2 + $0x8] sm:$0xff]  ;;  %v287_v6 = vmov 0   ;;  %v32_v14 = vlaneseq }
  0x13   :  { %vm235_vm1 = vmpackc.low %vm69_vm0, %vm69_vm0  ;;  %v61_v2 = vld [vmem:[%s358_s2] sm:$0xff]  ;;  %v234_v3 = vpack.c.bf16 %v64_v1, %v63_v0  ;;  %v62_v4 = vld [vmem:[%s358_s2 + $0x8] sm:$0xff]  ;;  %246 = vset.pattern.permute.xlu1 %v287_v6  ;;  %247 = vset.pattern.permute.xlu0 %v287_v6  ;;  %vm159_vm2 = vcmask 130048   ;;  %vm288_vm5 = vmmov 1   ;;  %v289_v31 = vmov 0.0  }
  0x14   :  { %231 = vmatprep.mubr.msk.f32.mxu0 %vm69_vm0, %v61_v2  ;;  %v42_v5 = vld [vmem:[%s356_s0] sm:$0xff]  ;;  %v43_v7 = vld [vmem:[%s356_s0 + $0x8] sm:$0xff]  ;;  %v33_v15 = vshrl.u32 %v32_v14, 7  ;;  %v39_v16 = vand.u32 127, %v32_v14  ;;  %vm208_vm12 = vcmask 7168  }
  0x15   :  { %236 = vmatprep.subr.msk.bf16.mxu0 %vm235_vm1, %v234_v3  ;;  %46 = vperm.xlu1 %246, %v42_v5   ;;  %v216_v26 = vld [vmem:[%s357_s1] ss:$0 sm:$0xff] }
  0x16   :  { %239 = vmatpush3.bf16.xpose.msk.msra.mxu0 %vm235_vm1, %v234_v3  ;;  %vm40_vm3 = vcmp.eq.s32.totalorder %v33_v15, %v39_v16  ;;  %v34_v19 = vadd.s32 8, %v33_v15 }
  0x17   :  { %vm57_vm6 = vmxor %vm40_vm3, %vm288_vm5 }
  0x18   :  { %vm41_vm4 = vcmp.eq.s32.totalorder %v34_v19, %v39_v16 }
  0x19   :  { %49 = vperm.xlu1 %246, %v43_v7   ;;  %vm58_vm9 = vmxor %vm41_vm4, %vm288_vm5 }
  0x1d   :  { %232 = vmatmul.mubr.msk.f32.vlgmr.msra.gmra.mrb[0].mxu0 %vm69_vm0, %v62_v4 }
  0x94   :  { %v47_v27 = vpop.permute.xlu1 %46 }
  0x95   :  { %vm55_vm7 = vcmp.eq.s32.totalorder %v47_v27, %v216_v26 }
  0x96   :  { %vm59_vm8 = vmand %vm55_vm7, %vm57_vm6 }
  0x97   :  { %v217_v32 = vsel %vm59_vm8, 1.0, %v289_v31 }
  0x98   :  { %v50_v28 = vpop.permute.xlu1 %49  ;;  %v184_v33 = vsel %vm159_vm2, %v217_v32, 0.0 }
  0x99   :  { %vm56_vm10 = vcmp.eq.s32.totalorder %v50_v28, %v216_v26 }
  0x9a   :  { %vm60_vm11 = vmand %vm56_vm10, %vm58_vm9 }
  0x9b   :  { %v218_v36 = vsel %vm60_vm11, 1.0, %v289_v31 }
  0x9c   :  { %v187_v37 = vsel %vm159_vm2, %v218_v36, 0.0 }
  0xf0   :  { %v233_v8 = vpop.f32.mrb[0].mxu0 }
  0xf1   :  { %v148_v9 = vpop.f32.mrb[1].mxu0  ;;  %v158_v11 = vmul.f32 14.285714, %v233_v8 }
  0xf2   :  { %v157_v10 = vmul.f32 14.285714, %v148_v9 }
  0xf3   :  { %v163_v13 = vsel %vm159_vm2, %v158_v11, -inf }
  0xf4   :  { %v160_v12 = vsel %vm159_vm2, %v157_v10, -inf }
  0xf5   :  { %161 = vmax.xlane.f32.xlu0 %v160_v12 }
  0xf9   :  { %164 = vmax.xlane.f32.xlu0 %v163_v13 }
 0x182   :  { %v162_v17 = vpop.xlane.xlu0 %161 }
 0x183   :  { %v166_v18 = vsub.f32 %v157_v10, %v162_v17 }
 0x185   :  { %v168_v20 = vsel %vm40_vm3, -1e+30, %v166_v18  ;;  %v190_v38 = vmul.f32 %v217_v32, %v166_v18 }
 0x186   :  { %v170_v21 = vmul.f32 1.442695, %v168_v20  ;;  %v165_v22 = vpop.xlane.xlu0 %164 }
 0x187   :  { %v167_v23 = vsub.f32 %v158_v11, %v165_v22  ;;  %v192_v39 = vsel %vm159_vm2, %v190_v38, 0.0 }
 0x188   :  { %248 = vpow2.f32 %v170_v21 }
 0x189   :  { %v169_v24 = vsel %vm41_vm4, -1e+30, %v167_v23  ;;  %v191_v40 = vmul.f32 %v218_v36, %v167_v23 }
 0x18a   :  { %v172_v25 = vmul.f32 1.442695, %v169_v24 }
 0x18b   :  { %v195_v41 = vsel %vm159_vm2, %v191_v40, 0.0 }
 0x18c   :  { %250 = vpow2.f32 %v172_v25 }
 0x192   :  { %v249_v29 = vpop.eup %248 }
 0x193   :  { %v174_v30 = vsel %vm159_vm2, %v249_v29, 0.0 }
 0x194   :  { %175 = vadd.xlane.f32.xlu0 %v174_v30 }
 0x196   :  { %v251_v34 = vpop.eup %250 }
 0x197   :  { %v177_v35 = vsel %vm159_vm2, %v251_v34, 0.0 }
 0x198   :  { %178 = vadd.xlane.f32.xlu1 %v177_v35  ;;  %185 = vadd.xlane.f32.xlu0 %v184_v33 }
 0x19c   :  { %188 = vadd.xlane.f32.xlu0 %v187_v37 }
 0x1a0   :  { %193 = vadd.xlane.f32.xlu0 %v192_v39 }
 0x1a4   :  { %196 = vadd.xlane.f32.xlu0 %v195_v41 }
 0x221   :  { %v176_v42 = vpop.xlane.xlu0 %175 }
 0x222   :  { %252 = vlog2.f32 %v176_v42 }
 0x225   :  { %v186_v43 = vpop.xlane.xlu0 %185  ;;  %v179_v44 = vpop.xlane.xlu1 %178 }
 0x226   :  { %254 = vrcp.f32 %v186_v43 }
 0x227   :  { %256 = vlog2.f32 %v179_v44 }
 0x229   :  { %v189_v45 = vpop.xlane.xlu0 %188 }
 0x22a   :  { %258 = vrcp.f32 %v189_v45 }
 0x22c   :  { %v253_v46 = vpop.eup %252 }
 0x22d   :  { %v181_v47 = vmul.f32 0.6931472, %v253_v46  ;;  %v194_v49 = vpop.xlane.xlu0 %193 }
 0x22f   :  { %v198_v48 = vmul.f32 %v186_v43, %v181_v47 }
 0x230   :  { %v255_v50 = vpop.eup %254 }
 0x231   :  { %v257_v51 = vpop.eup %256  ;;  %v200_v52 = vsub.f32 %v194_v49, %v198_v48  ;;  %v197_v57 = vpop.xlane.xlu0 %196 }
 0x232   :  { %v183_v53 = vmul.f32 0.6931472, %v257_v51 }
 0x233   :  { %v203_v54 = vmul.f32 %v255_v50, %v200_v52 }
 0x234   :  { %v199_v55 = vmul.f32 %v189_v45, %v183_v53  ;;  %v259_v59 = vpop.eup %258 }
 0x235   :  { %v206_v56 = vmul.f32 -1.0, %v203_v54 }
 0x236   :  { %v201_v58 = vsub.f32 %v197_v57, %v199_v55 }
 0x237   :  { %209 = vst.msk [vmem:[%s360_s4] sm:$0xff] %vm208_vm12, %v206_v56 }
 0x238   :  { %v205_v60 = vmul.f32 %v259_v59, %v201_v58 }
 0x23a   :  { %v207_v61 = vmul.f32 -1.0, %v205_v60 }
 0x23c   :  { %210 = vst.msk [vmem:[%s360_s4 + $0x8] sm:$0xff] %vm208_vm12, %v207_v61 }
 0x23d   :  { %215 = vsyncpa [#allocation3], 1 }

</bundles_post_ra>
